<compile_context>
chip_gen: v6e
topology: v6e:2x2x1
jax: 0.10.0
libtpu: 0.0.40
codegen_flags: <defaults>
</compile_context>

<pallas_src>
import functools

import jax
import jax.numpy as jnp
from jax import lax
from jax.experimental import pallas as pl
from jax.experimental.pallas import tpu as pltpu


def _kd_loss_kernel(out_ref, lab_ref, teach_ref, part_ref, *,
                    alpha, temperature, batch, classes, block_rows, steps,
                    masked):
    """Processes one (block_rows, C) tile; accumulates the pre-weighted loss
    contribution into the per-shard resident output block."""
    c = pl.program_id(0)          # parallel shard (TensorCore split on v7x)
    i = pl.program_id(1)          # serial reduction step within the shard

    @pl.when(i == 0)
    def _init():
        part_ref[...] = jnp.zeros_like(part_ref)

    x = out_ref[...].astype(jnp.float32)    # student logits   (TB, C)
    y = lab_ref[...].astype(jnp.float32)    # targets in [0,1] (TB, C)
    t = teach_ref[...].astype(jnp.float32)  # teacher logits   (TB, C)

    T = jnp.float32(temperature)

    # --- student log_softmax(x / T, dim=1) ---------------------------------
    xs = x / T
    xs = xs - jnp.max(xs, axis=1, keepdims=True)
    log_p = xs - jnp.log(jnp.sum(jnp.exp(xs), axis=1, keepdims=True))

    # --- teacher softmax / log-softmax sharing one exp pass -----------------
    # q = e_t * (1/s_t) (per-row approx reciprocal on the EUP) instead of
    # exp(log_q): removes one full-tile exp per teacher element.
    ts = t / T
    ts = ts - jnp.max(ts, axis=1, keepdims=True)
    e_t = jnp.exp(ts)
    s_t = jnp.sum(e_t, axis=1, keepdims=True)
    log_q = ts - jnp.log(s_t)
    q = e_t * pl.reciprocal(s_t, approx=True)

    # --- fused, pre-weighted per-element loss -------------------------------
    kl_elem = q * (log_q - log_p)
    bce_elem = jnp.maximum(x, 0.0) - x * y + jnp.log1p(jnp.exp(-jnp.abs(x)))

    kl_w = jnp.float32(alpha * temperature * temperature / batch)   # batchmean * a*T^2
    bce_w = jnp.float32((1.0 - alpha) / (batch * classes))          # mean * (1-a)
    elem = kl_elem * kl_w + bce_elem * bce_w

    if masked:  # trace-time branch: only emitted when B % block_rows != 0
        row = (c * steps + i) * block_rows + lax.broadcasted_iota(
            jnp.int32, (block_rows, 1), 0)
        elem = jnp.where(row < jnp.int32(batch), elem, 0.0)

    # Single cross-lane/sublane reduction per tile; broadcast-add the scalar
    # into the resident per-shard output block (written back once per shard).
    part_ref[...] += jnp.sum(elem)


def _vmem_budget_and_limit():
    """Generation-aware VMEM sizing (v5e/v6e: 128 MiB, v7x: 64 MiB)."""
    cap = 128 * 1024 * 1024
    try:
        cap = int(pltpu.get_tpu_info().vmem_capacity_bytes)
    except Exception:
        pass  # fall back to the 128 MiB default
    budget = int(cap * 0.6)   # what the tile picker may consume
    limit = int(cap * 0.8)    # scoped compiler limit, ~20% headroom
    return budget, limit


def _choose_tiling(B, C, itemsizes, vmem_budget_bytes, buffer_count=2):
    """Pick (block_rows, steps, shards): inputs (buffer_count deep) + ~6 live
    f32 (TB, C) intermediates must fit the VMEM budget."""
    min_item = min(itemsizes)
    sub = max(8, 32 // min_item)            # 8 f32 / 16 bf16 / 32 int8-fp8
    if B <= sub:
        return B, 1, 1                      # block == full dim, no constraints
    per_row = buffer_count * C * sum(itemsizes) + 6 * C * 4
    tb = vmem_budget_bytes // max(per_row, 1)
    tb = max(sub, min(tb, B, 1024))
    tb = max(sub, (tb // sub) * sub)
    total = pl.cdiv(B, tb)
    shards = 2 if (total >= 2 and total % 2 == 0) else 1
    steps = total // shards
    return tb, steps, shards


def kd_loss_pallas(outputs, labels, teacher_outputs, *, alpha, temperature,
                   block_rows=None, buffer_count=2):
    B, C = outputs.shape
    assert labels.shape == (B, C) and teacher_outputs.shape == (B, C)
    itemsizes = [jnp.dtype(a.dtype).itemsize
                 for a in (outputs, labels, teacher_outputs)]

    vmem_budget, vmem_limit = _vmem_budget_and_limit()
    if block_rows is None:
        block_rows, steps, shards = _choose_tiling(
            B, C, itemsizes, vmem_budget, buffer_count)
    else:
        total = pl.cdiv(B, block_rows)
        shards = 2 if (total >= 2 and total % 2 == 0) else 1
        steps = total // shards

    masked = (B % block_rows) != 0

    kernel = functools.partial(
        _kd_loss_kernel, alpha=alpha, temperature=temperature, batch=B,
        classes=C, block_rows=block_rows, steps=steps, masked=masked)

    def in_spec():
        kwargs = {}
        if buffer_count != 2:               # optional deeper input buffering
            kwargs["pipeline_mode"] = pl.Buffered(buffer_count)
        return pl.BlockSpec((block_rows, C), lambda c, i: (c * steps + i, 0),
                            **kwargs)

    partials = pl.pallas_call(
        kernel,
        out_shape=jax.ShapeDtypeStruct((shards, 8, 128), jnp.float32),
        grid_spec=pltpu.PrefetchScalarGridSpec(
            num_scalar_prefetch=0,
            grid=(shards, steps),
            in_specs=[in_spec(), in_spec(), in_spec()],
            out_specs=pl.BlockSpec((1, 8, 128), lambda c, i: (c, 0, 0)),
        ),
        compiler_params=pltpu.CompilerParams(
            dimension_semantics=("parallel", "arbitrary"),
            vmem_limit_bytes=vmem_limit,
        ),
    )(outputs, labels, teacher_outputs)

    # Weights are folded into the in-kernel accumulation; finalize is one add.
    return jnp.sum(partials[:, 0, 0])


def kd_loss_ref(outputs, labels, teacher_outputs, *, alpha, temperature):
    """Pure-JAX reference mirroring the PyTorch module."""
    T = temperature
    o = outputs.astype(jnp.float32)
    t = teacher_outputs.astype(jnp.float32)
    y = labels.astype(jnp.float32)
    log_p = jax.nn.log_softmax(o / T, axis=1)
    log_q = jax.nn.log_softmax(t / T, axis=1)
    q = jnp.exp(log_q)
    kl = jnp.sum(q * (log_q - log_p)) / outputs.shape[0]
    bce = jnp.mean(jnp.maximum(o, 0.0) - o * y + jnp.log1p(jnp.exp(-jnp.abs(o))))
    return kl * (alpha * T * T) + bce * (1.0 - alpha)


if __name__ == "__main__":
    # KdLoss(alpha, temperature) — deterministic hyper-parameters.
    alpha = 0.7
    temperature = 4.0

    # Lane-dense demo shapes (C multiple of 128).
    B, C = 128, 256
    key = jax.random.PRNGKey(0)
    k1, k2, k3 = jax.random.split(key, 3)
    outputs = jax.random.normal(k1, (B, C), dtype=jnp.float32)
    teacher_outputs = jax.random.normal(k2, (B, C), dtype=jnp.float32)
    labels = jax.random.uniform(k3, (B, C), dtype=jnp.float32)  # soft targets

    ref = kd_loss_ref(outputs, labels, teacher_outputs,
                      alpha=alpha, temperature=temperature)

    # 1) Explicit small tile -> grid (2 shards x 2 steps): exercises the
    #    parallel axis + resident-accumulator path.
    loss = kd_loss_pallas(outputs, labels, teacher_outputs,
                          alpha=alpha, temperature=temperature, block_rows=32)
    loss = jax.block_until_ready(loss)
    # Tolerance accounts for the EUP approximate reciprocal in the teacher
    # softmax (per-row, ~1e-4 relative) on top of f32 rounding.
    assert jnp.allclose(loss, ref, rtol=2e-3, atol=2e-3), (loss, ref)

    # 2) Auto tiling: generation-aware VMEM budget picks the tile size.
    loss_auto = kd_loss_pallas(outputs, labels, teacher_outputs,
                               alpha=alpha, temperature=temperature)
    loss_auto = jax.block_until_ready(loss_auto)
    assert jnp.allclose(loss_auto, ref, rtol=2e-3, atol=2e-3), (loss_auto, ref)

    # 3) Ragged batch (mask path) with bf16 inputs (all math in f32).
    Br = 100
    o_bf = outputs[:Br].astype(jnp.bfloat16)
    t_bf = teacher_outputs[:Br].astype(jnp.bfloat16)
    y_bf = labels[:Br].astype(jnp.bfloat16)
    loss_bf = kd_loss_pallas(o_bf, y_bf, t_bf, alpha=alpha,
                             temperature=temperature, block_rows=32)
    loss_bf = jax.block_until_ready(loss_bf)
    ref_bf = kd_loss_ref(o_bf, y_bf, t_bf, alpha=alpha, temperature=temperature)
    assert jnp.allclose(loss_bf, ref_bf, rtol=2e-2, atol=2e-2), (loss_bf, ref_bf)

    print("KERNEL_OK")
</pallas_src>

<mosaic_0001>
module attributes {stable_mosaic.version = 11 : i64} {
  func.func @_kd_loss_kernel(%arg0: i32, %arg1: i32, %arg2: memref<32x256xf32, #tpu.memory_space<vmem>>, %arg3: memref<32x256xf32, #tpu.memory_space<vmem>>, %arg4: memref<32x256xf32, #tpu.memory_space<vmem>>, %arg5: memref<1x8x128xf32, #tpu.memory_space<vmem>>) attributes {dimension_semantics = [#tpu.dimension_semantics<parallel>, #tpu.dimension_semantics<arbitrary>], iteration_bounds = array<i64: 2, 2>, scalar_prefetch = 0 : i64, scratch_operands = 0 : i64, tpu.core_type = #tpu.core_type<tc>, window_params = [{transform_indices = @transform_0, window_bounds = array<i64: 32, 256>}, {transform_indices = @transform_1, window_bounds = array<i64: 32, 256>}, {transform_indices = @transform_2, window_bounds = array<i64: 32, 256>}, {transform_indices = @transform_3, window_bounds = array<i64: 1, 8, 128>}]} {
    %c0_i32 = arith.constant 0 : i32
    %0 = arith.cmpi eq, %arg1, %c0_i32 : i32
    %1 = arith.extui %0 : i1 to i32
    %c0_i32_0 = arith.constant 0 : i32
    %2 = arith.cmpi ne, %1, %c0_i32_0 : i32
    scf.if %2 {
      %cst_22 = arith.constant 0.000000e+00 : f32
      %58 = vector.broadcast %cst_22 : f32 to vector<1x8x128xf32>
      %c0_23 = arith.constant 0 : index
      %c0_24 = arith.constant 0 : index
      %c0_25 = arith.constant 0 : index
      %59 = vector.load %arg5[%c0_23, %c0_24, %c0_25] : memref<1x8x128xf32, #tpu.memory_space<vmem>>, vector<1x8x128xf32>
      tpu.vector_store %arg5[%c0_23, %c0_24, %c0_25], %58 {strides = array<i32>} : memref<1x8x128xf32, #tpu.memory_space<vmem>>, vector<1x8x128xf32>,
    } else {
    }
    %c0 = arith.constant 0 : index
    %c0_1 = arith.constant 0 : index
    %3 = vector.load %arg2[%c0, %c0_1] : memref<32x256xf32, #tpu.memory_space<vmem>>, vector<32x256xf32>
    %c0_2 = arith.constant 0 : index
    %c0_3 = arith.constant 0 : index
    %4 = vector.load %arg3[%c0_2, %c0_3] : memref<32x256xf32, #tpu.memory_space<vmem>>, vector<32x256xf32>
    %c0_4 = arith.constant 0 : index
    %c0_5 = arith.constant 0 : index
    %5 = vector.load %arg4[%c0_4, %c0_5] : memref<32x256xf32, #tpu.memory_space<vmem>>, vector<32x256xf32>
    %cst = arith.constant 4.000000e+00 : f32
    %6 = vector.broadcast %cst : f32 to vector<32x256xf32>
    %7 = arith.divf %3, %6 : vector<32x256xf32>
    %cst_6 = arith.constant dense<0xFF800000> : vector<32xf32>
    %8 = vector.multi_reduction <maximumf>, %7, %cst_6 [1] : vector<32x256xf32> to vector<32xf32>
    %9 = vector.shape_cast %8 : vector<32xf32> to vector<32x1xf32>
    %10 = vector.broadcast %9 : vector<32x1xf32> to vector<32x256xf32>
    %11 = arith.subf %7, %10 : vector<32x256xf32>
    %12 = math.exp %11 : vector<32x256xf32>
    %cst_7 = arith.constant dense<0.000000e+00> : vector<32xf32>
    %13 = vector.multi_reduction <add>, %12, %cst_7 [1] : vector<32x256xf32> to vector<32xf32>
    %14 = vector.shape_cast %13 : vector<32xf32> to vector<32x1xf32>
    %15 = math.log %14 : vector<32x1xf32>
    %16 = vector.broadcast %15 : vector<32x1xf32> to vector<32x256xf32>
    %17 = arith.subf %11, %16 : vector<32x256xf32>
    %cst_8 = arith.constant 4.000000e+00 : f32
    %18 = vector.broadcast %cst_8 : f32 to vector<32x256xf32>
    %19 = arith.divf %5, %18 : vector<32x256xf32>
    %cst_9 = arith.constant dense<0xFF800000> : vector<32xf32>
    %20 = vector.multi_reduction <maximumf>, %19, %cst_9 [1] : vector<32x256xf32> to vector<32xf32>
    %21 = vector.shape_cast %20 : vector<32xf32> to vector<32x1xf32>
    %22 = vector.broadcast %21 : vector<32x1xf32> to vector<32x256xf32>
    %23 = arith.subf %19, %22 : vector<32x256xf32>
    %24 = math.exp %23 : vector<32x256xf32>
    %cst_10 = arith.constant dense<0.000000e+00> : vector<32xf32>
    %25 = vector.multi_reduction <add>, %24, %cst_10 [1] : vector<32x256xf32> to vector<32xf32>
    %26 = vector.shape_cast %25 : vector<32xf32> to vector<32x1xf32>
    %27 = math.log %26 : vector<32x1xf32>
    %28 = vector.broadcast %27 : vector<32x1xf32> to vector<32x256xf32>
    %29 = arith.subf %23, %28 : vector<32x256xf32>
    %30 = tpu.reciprocal %26 {approx = true} : vector<32x1xf32> -> vector<32x1xf32>
    %31 = vector.broadcast %30 : vector<32x1xf32> to vector<32x256xf32>
    %32 = arith.mulf %24, %31 : vector<32x256xf32>
    %33 = arith.subf %29, %17 : vector<32x256xf32>
    %34 = arith.mulf %32, %33 : vector<32x256xf32>
    %cst_11 = arith.constant 0.000000e+00 : f32
    %35 = vector.broadcast %cst_11 : f32 to vector<32x256xf32>
    %36 = arith.maximumf %3, %35 : vector<32x256xf32>
    %37 = arith.mulf %3, %4 : vector<32x256xf32>
    %38 = arith.subf %36, %37 : vector<32x256xf32>
    %39 = math.absf %3 : vector<32x256xf32>
    %cst_12 = arith.constant 0.000000e+00 : f32
    %40 = vector.broadcast %cst_12 : f32 to vector<32x256xf32>
    %41 = arith.subf %40, %39 : vector<32x256xf32>
    %42 = math.exp %41 : vector<32x256xf32>
    %43 = math.log1p %42 : vector<32x256xf32>
    %44 = arith.addf %38, %43 : vector<32x256xf32>
    %cst_13 = arith.constant 0.0874999985 : f32
    %45 = vector.broadcast %cst_13 : f32 to vector<32x256xf32>
    %46 = arith.mulf %34, %45 : vector<32x256xf32>
    %cst_14 = arith.constant 9.1552738E-6 : f32
    %47 = vector.broadcast %cst_14 : f32 to vector<32x256xf32>
    %48 = arith.mulf %44, %47 : vector<32x256xf32>
    %49 = arith.addf %46, %48 : vector<32x256xf32>
    %c0_15 = arith.constant 0 : index
    %c0_16 = arith.constant 0 : index
    %c0_17 = arith.constant 0 : index
    %50 = vector.load %arg5[%c0_15, %c0_16, %c0_17] : memref<1x8x128xf32, #tpu.memory_space<vmem>>, vector<1x8x128xf32>
    %51 = vector.shape_cast %49 : vector<32x256xf32> to vector<1x32x256xf32>
    %cst_18 = arith.constant dense<0.000000e+00> : vector<1xf32>
    %52 = vector.multi_reduction <add>, %51, %cst_18 [1, 2] : vector<1x32x256xf32> to vector<1xf32>
    %53 = vector.shape_cast %52 : vector<1xf32> to vector<1x1x1xf32>
    %54 = vector.extract %53[0, 0, 0] : f32 from vector<1x1x1xf32>
    %55 = vector.broadcast %54 : f32 to vector<1x8x128xf32>
    %56 = arith.addf %50, %55 : vector<1x8x128xf32>
    %c0_19 = arith.constant 0 : index
    %c0_20 = arith.constant 0 : index
    %c0_21 = arith.constant 0 : index
    %57 = vector.load %arg5[%c0_19, %c0_20, %c0_21] : memref<1x8x128xf32, #tpu.memory_space<vmem>>, vector<1x8x128xf32>
    tpu.vector_store %arg5[%c0_19, %c0_20, %c0_21], %56 {strides = array<i32>} : memref<1x8x128xf32, #tpu.memory_space<vmem>>, vector<1x8x128xf32>,
    return
  }
  func.func @transform_0(%arg0: i32, %arg1: i32) -> (i32, i32) {
    %c2_i32 = arith.constant 2 : i32
    %0 = arith.muli %arg0, %c2_i32 : i32
    %1 = arith.addi %0, %arg1 : i32
    %c0_i32 = arith.constant 0 : i32
    %c0_i32_0 = arith.constant 0 : i32
    return %1, %c0_i32 : i32, i32
  }
  func.func @transform_1(%arg0: i32, %arg1: i32) -> (i32, i32) {
    %c2_i32 = arith.constant 2 : i32
    %0 = arith.muli %arg0, %c2_i32 : i32
    %1 = arith.addi %0, %arg1 : i32
    %c0_i32 = arith.constant 0 : i32
    %c0_i32_0 = arith.constant 0 : i32
    return %1, %c0_i32 : i32, i32
  }
  func.func @transform_2(%arg0: i32, %arg1: i32) -> (i32, i32) {
    %c2_i32 = arith.constant 2 : i32
    %0 = arith.muli %arg0, %c2_i32 : i32
    %1 = arith.addi %0, %arg1 : i32
    %c0_i32 = arith.constant 0 : i32
    %c0_i32_0 = arith.constant 0 : i32
    return %1, %c0_i32 : i32, i32
  }
  func.func @transform_3(%arg0: i32, %arg1: i32) -> (i32, i32, i32) {
    %c0_i32 = arith.constant 0 : i32
    %c0_i32_0 = arith.constant 0 : i32
    %c0_i32_1 = arith.constant 0 : i32
    return %arg0, %c0_i32, %c0_i32_0 : i32, i32, i32
  }
}

</mosaic_0001>

<bundles_post_ra>
// kernel: tpu_custom_call.1
= control target key start
LH: loop header
LB: loop body
LE: loop exit
PB: predicated region body
PF: predicated region fallthrough
CT: control target
= control target key end

     0   :  { %s1859_s0 = inlined_call_operand.hbm [shape: f32[128,256], index: 0, kind: input, shape index: {}]   ;;  %s1860_s1 = inlined_call_operand.hbm [shape: f32[128,256], index: 1, kind: input, shape index: {}]   ;;  %s1861_s2 = inlined_call_operand.hbm [shape: f32[128,256], index: 2, kind: input, shape index: {}]   ;;  %s1862_s3 = inlined_call_operand.hbm [shape: f32[2,8,128], index: 3, kind: output, shape index: {}]  }
   0x1   :  { %1876 = sst [smem:[#allocation24_spill]] %s1859_s0 }
   0x2   :  { %1877 = sst [smem:[#allocation25_spill]] %s1860_s1 }
   0x3   :  { %8 = vsyncpa [#allocation3], 0 }
   0x4   :  { %10 = vsyncpa [#allocation3 + $0x1], 0 }
   0x5   :  { %11 = vsyncpa [#allocation6], 0 }
   0x6   :  { %13 = vsyncpa [#allocation6 + $0x1], 0 }
   0x7   :  { %14 = vsyncpa [#allocation4], 0 }
   0x8   :  { %16 = vsyncpa [#allocation4 + $0x1], 0  ;;  %s1317_s12 = smov 0   ;;  %s1319_s13 = smov 0  }
   0x9   :  { %s1321_s14 = smov 0   ;;  %s1323_s15 = smov 0  }
   0xa   :  { %s1325_s16 = smov 0   ;;  %s1327_s17 = smov 0  }
   0xb   :  { %s1329_s18 = smov 0   ;;  %s1331_s19 = smov 0  }
   0xc   :  { %s1333_s20 = smov 0   ;;  %s1335_s21 = smov 0  }
   0xd   :  { %s1337_s22 = smov 0  }
   0xe LB: > { %1878 = sst [smem:[#allocation12_spill]] %s1256_s14  ;;  %s1371_s23 = sadd.s32 4294967295, %s1288_s22   ;;  %s1288_s22 = sphi %s1337_s22, %s22_s22   ;;  %s1284_s21 = sphi %s1335_s21, %s1927_s21   ;;  %s1280_s20 = sphi %s1333_s20, %s1926_s20   ;;  %s1276_s19 = sphi %s1331_s19, %s1925_s19   ;;  %s1272_s18 = sphi %s1329_s18, %s1924_s18   ;;  %s1268_s17 = sphi %s1327_s17, %s1923_s17   ;;  %s1264_s16 = sphi %s1325_s16, %s1931_s16   ;;  %s1260_s15 = sphi %s1323_s15, %s1930_s15   ;;  %s1256_s14 = sphi %s1321_s14, %s1921_s14   ;;  %s1252_s13 = sphi %s1319_s13, %s1929_s13   ;;  %s1248_s12 = sphi %s1317_s12, %s1928_s12  }
   0xf   : > { %1879 = sst [smem:[#allocation13_spill]] %s1268_s17  ;;  %s835_s24 = sadd.s32 4294967294, %s1288_s22  }
  0x10   : > { %1880 = sst [smem:[#allocation14_spill]] %s1280_s20  ;;  %s31_s25 = sadd.s32 1, %s1280_s20 }
  0x11   : > { %1881 = sst [smem:[#allocation15_spill]] %s1284_s21  ;;  %s34_s26 = sadd.s32 1, %s1284_s21 }
  0x12   : > { %p32_p0 = scmp.ge.s32.totalorder %s31_s25, 2  ;;  %s836_s27 = sshll.u32 %s1284_s21, 1 }
  0x13   : > { %s1378_s28 = sadd.s32 %s1280_s20, %s836_s27  ;;  %s45_s29 = sadd.s32 1, %s1268_s17 }
  0x14   : > { %s1933_s25 = smov (%p32_p0, %s31_s25), 0  ;;  %s1935_s26 = smov (!%p32_p0, %s34_s26), %s1284_s21 }
  0x15   : > { %1882 = sst [smem:[#allocation16_spill]] %s1933_s25  ;;  %p52_p1 = scmp.ne.s32.totalorder %s1268_s17, %s1264_s16 }
  0x16   : > { %p53_p2 = scmp.eq.s32.totalorder %s1288_s22, 0  ;;  %p36_p3 = scmp.ge.s32.totalorder %s1935_s26, 2 }
  0x17   : > { %p58_p4 = scmp.ne.s32.totalorder %s1264_s16, %s1260_s15  ;;  %p59_p6 = scmp.eq.s32.totalorder %s1371_s23, 0 }
  0x18   : > { %p1388_p5 = por %p53_p2, %p52_p1  ;;  %s1937_s26 = smov (%p36_p3, %s1935_s26), 0 }
  0x19   : > { %1884 = sst [smem:[#allocation17_spill]] %s1937_s26  ;;  %p1395_p7 = por %p59_p6, %p58_p4 }
  0x1a   : > { %s131_s5 = sadd.s32 1, %s1256_s14  ;;  %s837_s6 = sshll.u32 %s1937_s26, 1 }
  0x1b   : > { %s128_s7 = ssub.s32 %s1284_s21, %s1937_s26  ;;  %s41_s8 = sadd.s32 %s837_s6, %s1933_s25 }
  0x1c   : > { %p129_p8 = scmp.eq.s32.totalorder %s128_s7, 0  ;;  %s42_s9 = ssub.s32 %s1378_s28, %s41_s8 }
  0x1d   : > { %p141_p9 = scmp.ne.s32.totalorder %s1256_s14, %s1252_s13  ;;  %p43_p10 = scmp.eq.s32.totalorder %s42_s9, 0 }
  0x1e   : > { %p142_p11 = scmp.eq.s32.totalorder %s1371_s23, 3  ;;  %p147_p13 = scmp.ne.s32.totalorder %s1252_s13, %s1248_s12 }
  0x1f   : > { %s1409_s10 = scalar_select %p129_p8, %s1256_s14, %s131_s5  }
  0x20   : > { %s1412_s11 = scalar_select %p43_p10, %s1268_s17, %s45_s29  }
  0x21   : > { %1886 = sst [smem:[#allocation18_spill]] %s1409_s10  ;;  %p1414_p12 = por %p142_p11, %p141_p9 }
  0x22   : > { %1887 = sst [smem:[#allocation19_spill]] %s1412_s11  ;;  %p148_p0 = scmp.eq.s32.totalorder %s835_s24, 3 }
  0x23   : > { %p899_p1 = scmp.lt.s32.totalorder %s1288_s22, 4  ;;  %s1866_s27 = sand.u32 1, %s1268_s17  }
  0x24   : > { %p1424_p2 = por %p148_p0, %p147_p13  ;;  %s1430_s7 = sshll.u32 %s1866_s27, 6 }
  0x25   : > { %s1433_s5 = sshll.u32 %s1378_s28, 10  ;;  %p1437_p3 = pnand %p899_p1, %p1388_p5 }
  0x26   : > { %s192_s24 = sand.u32 1, %s1288_s22   ;;  %s1891_s1 = sld [smem:[#allocation25_spill]] }
  0x27   : > { %s196_s25 = scalar_lea.vmem [#allocation5], %s1430_s7  ;;  %p859_p4 = scmp.ge.s32.totalorder %s1288_s22, 1 }
  0x28   : > { %s206_s21 = sshll.u32 %s196_s25, 4  ;;  %s1448_s27 = scalar_lea.sflag [#allocation6], %s192_s24  ;;  %s207_s21 = int_to_ptr.vmem [resolvable:$true] %s206_s21 }
  0x29   : > { %p1082_p6 = pneg %p1437_p3  ;;  %s1093_s28 = scalar_lea.vmem %s207_s21, 1024 }
  0x2a   : > { %p1094_p5 = scmp.ne.s32.totalorder %s207_s21, %s1093_s28  ;;  %s1290_s30 = smov [#allocation5]  }
  0x2b   : > { %s1098_s20 = sshll.u32 %s1290_s30, 4  ;;  %s1099_s20 = int_to_ptr.vmem [resolvable:$false] %s1098_s20 }
  0x2c   : > { %s205_s26 = scalar_lea.hbm %s1891_s1, %s1433_s5  ;;  %p1096_p8 = pnand %p1094_p5, %p1082_p6 }
  0x2d   : > { %s1100_s11 = scalar_lea.vmem %s1099_s20, 2048  ;;  %p1101_p10 = scmp.lt.s32.totalorder %s207_s21, %s1099_s20 }
  0x2e   : > { %p1097_p9 = pneg %p1096_p8  ;;  %p1102_p11 = scmp.lt.s32.totalorder %s1100_s11, %s1093_s28 }
  0x30   : > { %p1103_p13 = por %p1102_p11, %p1101_p10 }
  0x32   : > { %p1104_p0 = pnand %p1103_p13, %p1097_p9 }
  0x34   : > { %1107 = shalt.err (!%p1104_p0)
}
  0x35   : > { %s1869_s25 = smov 256   ;;  %s1292_s24 = smov 16  }
  0x36   : > { %891 = dma.hbm_to_vmem [thread:$0]  (!%p1437_p3), %s205_s26, 1024, %s207_s21, %s1448_s27, %s1869_s25, %s1869_s25, %s1292_s24  }
  0x37   : > { %p238_p1 = scmp.lt.s32.totalorder %s1288_s22, 5  ;;  %s1893_s0 = sld [smem:[#allocation24_spill]] }
  0x38   : > { %s172_s28 = scalar_lea.vmem [#allocation2], %s1430_s7  ;;  %s1894_s1 = sand.u32 1, %s1268_s17  }
  0x39   : > { %p1464_p5 = pnand %p859_p4, %p238_p1  ;;  %s182_s30 = sshll.u32 %s172_s28, 4  ;;  %s183_s30 = int_to_ptr.vmem [resolvable:$true] %s182_s30 }
  0x3a   : > { %s169_s10 = scalar_lea.sflag [#allocation3], %s1894_s1  ;;  %s1121_s14 = scalar_lea.vmem %s183_s30, 1024 }
  0x3b   : > { %p1122_p8 = scmp.ne.s32.totalorder %s183_s30, %s1121_s14  ;;  %s1293_s21 = smov [#allocation2]  }
  0x3c   : > { %s1126_s26 = sshll.u32 %s1293_s21, 4  ;;  %s1127_s26 = int_to_ptr.vmem [resolvable:$false] %s1126_s26 }
  0x3d   : > { %s181_s9 = scalar_lea.hbm %s1893_s0, %s1433_s5  ;;  %p1124_p9 = pnand %p1122_p8, %p1082_p6 }
  0x3e   : > { %s1128_s25 = scalar_lea.vmem %s1127_s26, 2048  ;;  %p1129_p4 = scmp.lt.s32.totalorder %s183_s30, %s1127_s26 }
  0x3f   : > { %p1125_p10 = pneg %p1124_p9  ;;  %p1130_p11 = scmp.lt.s32.totalorder %s1128_s25, %s1121_s14 }
  0x41   : > { %p1131_p13 = por %p1130_p11, %p1129_p4 }
  0x43   : > { %p1132_p0 = pnand %p1131_p13, %p1125_p10 }
  0x45   : > { %1135 = shalt.err (!%p1132_p0)
}
  0x46   : > { %s1895_s11 = smov 256   ;;  %s229_s28 = scalar_lea.hbm %s1861_s2, %s1433_s5 }
  0x47   : > { %888 = dma.hbm_to_vmem [thread:$0]  (!%p1437_p3), %s181_s9, 1024, %s183_s30, %s169_s10, %s1895_s11, %s1895_s11, %s1292_s24  }
  0x48   : > { %s220_s21 = scalar_lea.vmem [#allocation7], %s1430_s7  ;;  %s1294_s25 = smov [#allocation7]  }
  0x49   : > { %s230_s0 = sshll.u32 %s220_s21, 4  ;;  %s1154_s26 = sshll.u32 %s1294_s25, 4  ;;  %s231_s0 = int_to_ptr.vmem [resolvable:$true] %s230_s0  ;;  %s1155_s26 = int_to_ptr.vmem [resolvable:$false] %s1154_s26 }
  0x4a   : > { %s1149_s14 = scalar_lea.vmem %s231_s0, 1024  ;;  %s1156_s17 = scalar_lea.vmem %s1155_s26, 2048 }
  0x4b   : > { %p1150_p1 = scmp.ne.s32.totalorder %s231_s0, %s1149_s14  ;;  %p1157_p10 = scmp.lt.s32.totalorder %s231_s0, %s1155_s26 }
  0x4c   : > { %p1158_p4 = scmp.lt.s32.totalorder %s1156_s17, %s1149_s14 }
  0x4d   : > { %p1152_p8 = pnand %p1150_p1, %p1082_p6 }
  0x4e   : > { %p1159_p11 = por %p1158_p4, %p1157_p10 }
  0x4f   : > { %p1153_p9 = pneg %p1152_p8 }
  0x51   : > { %p1160_p13 = pnand %p1159_p11, %p1153_p9 }
  0x53   : > { %1163 = shalt.err (!%p1160_p13)
}
  0x54   : > { %894 = dma.hbm_to_vmem [thread:$0]  (!%p1437_p3), %s229_s28, 1024, %s231_s0, %s1448_s27, %s1895_s11, %s1895_s11, %s1292_s24  }
  0x55   : > { %242 = sbr.rel (%p1464_p5) target bundleno = 672 (0x2a0), region = 32 }
  0x5a   : > { %s244_s10 = sand.u32 1, %s1264_s16  }
  0x5b   : > { %s860_s7 = sshll.u32 %s244_s10, 6  ;;  %s245_s5 = scalar_lea.sflag [#allocation3], %s244_s10 }
  0x5c   : > { %s1500_s9 = scalar_lea.vmem [#allocation2], %s860_s7 }
  0x5d   : > { %1235 = dma.done.wait (%p1395_p7), %s245_s5, 1024  }
  0x5e   : > { %1237 = vsyncadd (%p1395_p7), %s245_s5, 4294966272  ;;  %s253_s17 = sand.u32 1, %s1371_s23   ;;  %s1507_s0 = scalar_lea.vmem [#allocation5], %s860_s7 }
  0x5f   : > { %s254_s29 = scalar_lea.sflag [#allocation6], %s253_s17 }
  0x60   : > { %1239 = dma.done.wait (%p1395_p7), %s254_s29, 2048  }
  0x61   : > { %1241 = vsyncadd (%p1395_p7), %s254_s29, 4294965248  ;;  %s296_s27 = sand.u32 1, %s1252_s13   ;;  %s1516_s20 = scalar_lea.vmem [#allocation7], %s860_s7 }
  0x62   : > { %s863_s24 = sshll.u32 %s296_s27, 3  ;;  %p864_p3 = scmp.ne.s32.totalorder %s1272_s18, 0 }
  0x63   : > { %s1518_s30 = scalar_lea.vmem [#allocation8], %s863_s24 }
  0x64   : > { %311 = sbr.rel (%p864_p3) target bundleno = 107 (0x6b), region = 48 }
  0x69   : > { %v1295_v0 = vmov 0.0  }
  0x6a   : > { %312 = vst [vmem:[%s1518_s30] sm:$0xff] %v1295_v0 }
  0x6b PF: > { %v1523_v1 = vld [vmem:[%s1500_s9] sm:$0xff]  ;;  %v1526_v2 = vld [vmem:[%s1500_s9 + $0x8] sm:$0xff]  ;;  %v1531_v5 = vld [vmem:[%s1500_s9 + $0x10] sm:$0xff]  ;;  %s866_s18 = sshll.u32 %s1276_s19, 7  ;;  %s704_s23 = sshll.u32 %s1518_s30, 4  ;;  %s705_s23 = int_to_ptr.vmem [resolvable:$true] %s704_s23 }
  0x6c   : > { %v338_v3 = vmul.f32 0.25, %v1523_v1  ;;  %v339_v4 = vmul.f32 0.25, %v1526_v2  ;;  %v1534_v6 = vld [vmem:[%s1500_s9 + $0x18] sm:$0xff]  ;;  %v340_v8 = vmul.f32 0.25, %v1531_v5  ;;  %v329_v10 = vld [vmem:[%s1516_s20] sm:$0xff]  ;;  %v330_v12 = vld [vmem:[%s1516_s20 + $0x8] sm:$0xff]  ;;  %s702_s8 = scalar_lea.hbm %s1862_s3, %s866_s18 }
  0x6d   : > { %v341_v9 = vmul.f32 0.25, %v1534_v6  ;;  %v331_v13 = vld [vmem:[%s1516_s20 + $0x10] sm:$0xff]  ;;  %v332_v14 = vld [vmem:[%s1516_s20 + $0x18] sm:$0xff]  ;;  %v1543_v15 = vld [vmem:[%s1500_s9 + $0x20] sm:$0xff]  ;;  %v410_v16 = vmul.f32 0.25, %v329_v10  ;;  %v411_v18 = vmul.f32 0.25, %v330_v12 }
  0x6e   : > { %v346_v7 = vmax.f32 %v338_v3, %v339_v4  ;;  %v1546_v17 = vld [vmem:[%s1500_s9 + $0x28] sm:$0xff]  ;;  %v412_v19 = vmul.f32 0.25, %v331_v13  ;;  %v413_v20 = vmul.f32 0.25, %v332_v14  ;;  %v342_v21 = vmul.f32 0.25, %v1543_v15  ;;  %v333_v24 = vld [vmem:[%s1516_s20 + $0x20] sm:$0xff]  ;;  %v1553_v27 = vld [vmem:[%s1500_s9 + $0x30] sm:$0xff] }
  0x6f   : > { %v349_v11 = vmax.f32 %v340_v8, %v341_v9  ;;  %v418_v22 = vmax.f32 %v410_v16, %v411_v18  ;;  %v343_v23 = vmul.f32 0.25, %v1546_v17  ;;  %v334_v25 = vld [vmem:[%s1516_s20 + $0x28] sm:$0xff]  ;;  %v1556_v28 = vld [vmem:[%s1500_s9 + $0x38] sm:$0xff]  ;;  %v414_v30 = vmul.f32 0.25, %v333_v24  ;;  %v335_v32 = vld [vmem:[%s1516_s20 + $0x30] sm:$0xff]  ;;  %s691_s28 = scalar_lea.sflag [#allocation4], %s296_s27 }
  0x70   : > { %347 = vmax.xlane.f32.xlu0 %v346_v7  ;;  %v421_v26 = vmax.f32 %v412_v19, %v413_v20  ;;  %v415_v31 = vmul.f32 0.25, %v334_v25  ;;  %v344_v33 = vmul.f32 0.25, %v1553_v27  ;;  %v345_v34 = vmul.f32 0.25, %v1556_v28  ;;  %v336_v35 = vld [vmem:[%s1516_s20 + $0x38] sm:$0xff]  ;;  %s1164_s21 = scalar_lea.vmem %s705_s23, 128  ;;  %s1296_s14 = smov [#allocation8]  }
  0x71   : > { %350 = vmax.xlane.f32.xlu1 %v349_v11  ;;  %v352_v29 = vmax.f32 %v342_v21, %v343_v23  ;;  %v416_v38 = vmul.f32 0.25, %v335_v32  ;;  %v417_v39 = vmul.f32 0.25, %v336_v35  ;;  %p1165_p7 = scmp.ne.s32.totalorder %s705_s23, %s1164_s21  ;;  %s1168_s25 = sshll.u32 %s1296_s14, 4  ;;  %s1169_s25 = int_to_ptr.vmem [resolvable:$false] %s1168_s25 }
  0x72   : > { %v424_v36 = vmax.f32 %v414_v30, %v415_v31  ;;  %v355_v37 = vmax.f32 %v344_v33, %v345_v34  ;;  %s1170_s19 = scalar_lea.vmem %s1169_s25, 256  ;;  %p1171_p0 = scmp.lt.s32.totalorder %s705_s23, %s1169_s25 }
  0x73   : > { %v427_v40 = vmax.f32 %v416_v38, %v417_v39  ;;  %p1166_p6 = pnand %p1165_p7, %p1414_p12  ;;  %p1172_p1 = scmp.lt.s32.totalorder %s1170_s19, %s1164_s21 }
  0x74   : > { %419 = vmax.xlane.f32.xlu0 %v418_v22 }
  0x75   : > { %422 = vmax.xlane.f32.xlu1 %v421_v26  ;;  %p1167_p5 = pneg %p1166_p6  ;;  %p1173_p8 = por %p1172_p1, %p1171_p0 }
  0x77   : > { %p1174_p9 = pnand %p1173_p8, %p1167_p5 }
  0x78   : > { %353 = vmax.xlane.f32.xlu0 %v352_v29 }
  0x79   : > { %425 = vmax.xlane.f32.xlu1 %v424_v36 }
  0x7c   : > { %356 = vmax.xlane.f32.xlu0 %v355_v37 }
  0x7d   : > { %428 = vmax.xlane.f32.xlu1 %v427_v40 }
  0xf9   : > { %v348_v41 = vpop.xlane.xlu0 %347 }
  0xfa   : > { %v1562_v42 = vsub.f32 %v338_v3, %v348_v41  ;;  %v1564_v43 = vsub.f32 %v339_v4, %v348_v41  ;;  %v351_v44 = vpop.xlane.xlu1 %350 }
  0xfb   : > { %v1568_v47 = vsub.f32 %v340_v8, %v351_v44  ;;  %v1570_v48 = vsub.f32 %v341_v9, %v351_v44 }
  0xfc   : > { %v366_v45 = vmul.f32 1.442695, %v1562_v42  ;;  %v368_v46 = vmul.f32 1.442695, %v1564_v43 }
  0xfd   : > { %v370_v49 = vmul.f32 1.442695, %v1568_v47  ;;  %v372_v50 = vmul.f32 1.442695, %v1570_v48  ;;  %v420_v51 = vpop.xlane.xlu0 %419 }
  0xfe   : > { %992 = vpow2.f32 %v366_v45  ;;  %v1574_v52 = vsub.f32 %v410_v16, %v420_v51  ;;  %v1576_v53 = vsub.f32 %v411_v18, %v420_v51  ;;  %v423_v54 = vpop.xlane.xlu1 %422 }
  0xff   : > { %994 = vpow2.f32 %v368_v46  ;;  %v1578_v55 = vsub.f32 %v412_v19, %v423_v54  ;;  %v1580_v56 = vsub.f32 %v413_v20, %v423_v54 }
 0x100   : > { %996 = vpow2.f32 %v370_v49  ;;  %v438_v57 = vmul.f32 1.442695, %v1574_v52  ;;  %v440_v58 = vmul.f32 1.442695, %v1576_v53 }
 0x101   : > { %998 = vpow2.f32 %v372_v50  ;;  %v442_v59 = vmul.f32 1.442695, %v1578_v55  ;;  %v444_v60 = vmul.f32 1.442695, %v1580_v56  ;;  %v354_v61 = vpop.xlane.xlu0 %353 }
 0x102   : > { %1000 = vpow2.f32 %v438_v57  ;;  %v1586_v62 = vsub.f32 %v342_v21, %v354_v61  ;;  %v1588_v63 = vsub.f32 %v343_v23, %v354_v61  ;;  %v426_v0 = vpop.xlane.xlu1 %425  ;;  %v534_v57 = vand.u32 2147483647, %v1523_v1 }
 0x103   : > { %1002 = vpow2.f32 %v440_v58  ;;  %v1590_v3 = vsub.f32 %v414_v30, %v426_v0  ;;  %v1592_v4 = vsub.f32 %v415_v31, %v426_v0  ;;  %v535_v58 = vand.u32 2147483647, %v1526_v2 }
 0x104   : > { %1004 = vpow2.f32 %v442_v59  ;;  %v374_v7 = vmul.f32 1.442695, %v1586_v62  ;;  %v376_v8 = vmul.f32 1.442695, %v1588_v63  ;;  %v536_v59 = vand.u32 2147483647, %v1531_v5 }
 0x105   : > { %1006 = vpow2.f32 %v444_v60  ;;  %v446_v9 = vmul.f32 1.442695, %v1590_v3  ;;  %v448_v10 = vmul.f32 1.442695, %v1592_v4  ;;  %v357_v11 = vpop.xlane.xlu0 %356  ;;  %v542_v60 = vsub.f32 0.0, %v534_v57 }
 0x106   : > { %1008 = vpow2.f32 %v374_v7  ;;  %v1598_v12 = vsub.f32 %v344_v33, %v357_v11  ;;  %v1600_v13 = vsub.f32 %v345_v34, %v357_v11  ;;  %v429_v14 = vpop.xlane.xlu1 %428  ;;  %v543_v61 = vsub.f32 0.0, %v535_v58  ;;  %v321_v58 = vld [vmem:[%s1507_s0] sm:$0xff] }
 0x107   : > { %1010 = vpow2.f32 %v376_v8  ;;  %v1602_v16 = vsub.f32 %v416_v38, %v429_v14  ;;  %v1604_v18 = vsub.f32 %v417_v39, %v429_v14  ;;  %v537_v0 = vand.u32 2147483647, %v1534_v6 }
 0x108   : > { %1012 = vpow2.f32 %v446_v9  ;;  %v378_v20 = vmul.f32 1.442695, %v1598_v12  ;;  %v380_v21 = vmul.f32 1.442695, %v1600_v13  ;;  %v544_v7 = vsub.f32 0.0, %v536_v59  ;;  %v322_v59 = vld [vmem:[%s1507_s0 + $0x8] sm:$0xff] }
 0x109   : > { %1896 = vst [vmem:[#allocation20_spill] sm:$0xff] %v1602_v16  ;;  %1897 = vst [vmem:[#allocation21_spill] sm:$0xff] %v1604_v18  ;;  %1014 = vpow2.f32 %v448_v10  ;;  %v450_v23 = vmul.f32 1.442695, %v1602_v16  ;;  %v452_v24 = vmul.f32 1.442695, %v1604_v18 }
 0x10a   : > { %1016 = vpow2.f32 %v378_v20  ;;  %v550_v8 = vmul.f32 1.442695, %v542_v60  ;;  %v552_v9 = vmul.f32 1.442695, %v543_v61  ;;  %v545_v10 = vsub.f32 0.0, %v537_v0 }
 0x10b   : > { %v993_v19 = vpop.eup %992  ;;  %1018 = vpow2.f32 %v380_v21  ;;  %v554_v11 = vmul.f32 1.442695, %v544_v7  ;;  %v539_v20 = vand.u32 2147483647, %v1546_v17  ;;  %v540_v21 = vand.u32 2147483647, %v1553_v27 }
 0x10c   : > { %v995_v22 = vpop.eup %994  ;;  %1020 = vpow2.f32 %v450_v23  ;;  %v556_v14 = vmul.f32 1.442695, %v545_v10  ;;  %v541_v23 = vand.u32 2147483647, %v1556_v28 }
 0x10d   : > { %v997_v25 = vpop.eup %996  ;;  %v382_v26 = vadd.f32 %v995_v22, %v993_v19  ;;  %1022 = vpow2.f32 %v452_v24  ;;  %v538_v19 = vand.u32 2147483647, %v1543_v15  ;;  %v547_v24 = vsub.f32 0.0, %v539_v20 }
 0x10e   : > { %v999_v29 = vpop.eup %998  ;;  %1024 = vpow2.f32 %v550_v8  ;;  %v510_v8 = vmax.f32 %v1523_v1, 0.0 }
 0x10f   : > { %383 = vadd.xlane.f32.xlu0 %v382_v26  ;;  %v385_v30 = vadd.f32 %v999_v29, %v997_v25  ;;  %v1610_v31 = vpop.eup %1000  ;;  %1026 = vpow2.f32 %v552_v9  ;;  %v546_v22 = vsub.f32 0.0, %v538_v19  ;;  %v548_v25 = vsub.f32 0.0, %v540_v21 }
 0x110   : > { %v1612_v32 = vpop.eup %1002  ;;  %1028 = vpow2.f32 %v554_v11  ;;  %v549_v29 = vsub.f32 0.0, %v541_v23  ;;  %v518_v9 = vmul.f32 %v321_v58, %v1523_v1  ;;  %v519_v19 = vmul.f32 %v322_v59, %v1526_v2 }
 0x111   : > { %v1614_v33 = vpop.eup %1004  ;;  %v454_v34 = vadd.f32 %v1612_v32, %v1610_v31  ;;  %1030 = vpow2.f32 %v556_v14  ;;  %v558_v26 = vmul.f32 1.442695, %v546_v22  ;;  %v511_v14 = vmax.f32 %v1526_v2, 0.0 }
 0x112   : > { %v1618_v35 = vpop.eup %1006 }
 0x113   : > { %386 = vadd.xlane.f32.xlu0 %v385_v30  ;;  %v1009_v36 = vpop.eup %1008  ;;  %455 = vadd.xlane.f32.xlu1 %v454_v34  ;;  %v457_v37 = vadd.f32 %v1618_v35, %v1614_v33  ;;  %v560_v30 = vmul.f32 1.442695, %v547_v24  ;;  %1032 = vpow2.f32 %v558_v26  ;;  %v323_v26 = vld [vmem:[%s1507_s0 + $0x10] sm:$0xff] }
 0x114   : > { %v1011_v38 = vpop.eup %1010 }
 0x115   : > { %v1622_v39 = vpop.eup %1012  ;;  %v388_v40 = vadd.f32 %v1011_v38, %v1009_v36  ;;  %v562_v36 = vmul.f32 1.442695, %v548_v25  ;;  %1034 = vpow2.f32 %v560_v30  ;;  %v526_v30 = vsub.f32 %v510_v8, %v518_v9 }
 0x116   : > { %v1624_v41 = vpop.eup %1014 }
 0x117   : > { %v1017_v44 = vpop.eup %1016  ;;  %458 = vadd.xlane.f32.xlu1 %v457_v37  ;;  %389 = vadd.xlane.f32.xlu0 %v388_v40  ;;  %v460_v45 = vadd.f32 %v1624_v41, %v1622_v39  ;;  %v564_v40 = vmul.f32 1.442695, %v549_v29  ;;  %1036 = vpow2.f32 %v562_v36  ;;  %v512_v36 = vmax.f32 %v1531_v5, 0.0 }
 0x118   : > { %v1019_v46 = vpop.eup %1018 }
 0x119   : > { %v1628_v49 = vpop.eup %1020  ;;  %v391_v50 = vadd.f32 %v1019_v46, %v1017_v44  ;;  %1038 = vpow2.f32 %v564_v40 }
 0x11a   : > { %1898 = vst [vmem:[#allocation22_spill] sm:$0xff] %v1628_v49  ;;  %v1630_v51 = vpop.eup %1022 }
 0x11b   : > { %1899 = vst [vmem:[#allocation23_spill] sm:$0xff] %v1630_v51  ;;  %461 = vadd.xlane.f32.xlu1 %v460_v45  ;;  %392 = vadd.xlane.f32.xlu0 %v391_v50  ;;  %v463_v54 = vadd.f32 %v1630_v51, %v1628_v49  ;;  %v1025_v34 = vpop.eup %1024 }
 0x11c   : > { %v1642_v37 = vpop.eup %1026  ;;  %v566_v44 = vadd.f32 1.0, %v1025_v34  ;;  %v569_v61 = vmul.f32 -0.5, %v1025_v34  ;;  %v572_v21 = vand.u32 2147483647, %v1025_v34 }
 0x11d   : > { %v1644_v38 = vpop.eup %1028  ;;  %v575_v45 = vadd.f32 1.0, %v1642_v37  ;;  %v578_v0 = vmul.f32 -0.5, %v1642_v37 }
 0x11e   : > { %v584_v46 = vadd.f32 1.0, %v1644_v38  ;;  %v1648_v50 = vpop.eup %1030  ;;  %1040 = vlog2.f32 %v566_v44  ;;  %v587_v10 = vmul.f32 -0.5, %v1644_v38  ;;  %v570_v24 = vadd.f32 1.0, %v569_v61 }
 0x11f   : > { %464 = vadd.xlane.f32.xlu1 %v463_v54  ;;  %1042 = vlog2.f32 %v575_v45  ;;  %v593_v54 = vadd.f32 1.0, %v1648_v50  ;;  %v579_v25 = vadd.f32 1.0, %v578_v0  ;;  %v527_v45 = vsub.f32 %v511_v14, %v519_v19  ;;  %v325_v14 = vld [vmem:[%s1507_s0 + $0x20] sm:$0xff] }
 0x120   : > { %1044 = vlog2.f32 %v584_v46  ;;  %v1651_v57 = vpop.eup %1032  ;;  %v588_v40 = vadd.f32 1.0, %v587_v10  ;;  %v581_v46 = vand.u32 2147483647, %v1642_v37  ;;  %v596_v58 = vmul.f32 -0.5, %v1648_v50 }
 0x121   : > { %1046 = vlog2.f32 %v593_v54  ;;  %v602_v11 = vadd.f32 1.0, %v1651_v57  ;;  %v590_v54 = vand.u32 2147483647, %v1644_v38  ;;  %vm1675_vm0 = vcmp.lt.f32.partialorder %v572_v21, 0.0004427343 }
 0x122   : > { %v1655_v60 = vpop.eup %1034  ;;  %v520_v61 = vmul.f32 %v323_v26, %v1531_v5  ;;  %v571_v9 = vmul.f32 %v1025_v34, %v570_v24  ;;  %v580_v10 = vmul.f32 %v1642_v37, %v579_v25  ;;  %v589_v49 = vmul.f32 %v1644_v38, %v588_v40 }
 0x123   : > { %v611_v22 = vadd.f32 1.0, %v1655_v60  ;;  %1048 = vlog2.f32 %v602_v11  ;;  %v324_v11 = vld [vmem:[%s1507_s0 + $0x18] sm:$0xff]  ;;  %vm1685_vm1 = vcmp.lt.f32.partialorder %v581_v46, 0.0004427343  ;;  %v513_v5 = vmax.f32 %v1534_v6, 0.0 }
 0x124   : > { %v1658_v7 = vpop.eup %1036  ;;  %vm1690_vm2 = vcmp.lt.f32.partialorder %v590_v54, 0.0004427343  ;;  %v597_v37 = vadd.f32 1.0, %v596_v58  ;;  %v599_v38 = vand.u32 2147483647, %v1648_v50  ;;  %v528_v25 = vsub.f32 %v512_v36, %v520_v61 }
 0x125   : > { %v620_v29 = vadd.f32 1.0, %v1658_v7  ;;  %1050 = vlog2.f32 %v611_v22  ;;  %v521_v22 = vmul.f32 %v324_v11, %v1534_v6  ;;  %v514_v26 = vmax.f32 %v1543_v15, 0.0 }
 0x126   : > { %v1666_v20 = vpop.eup %1038  ;;  %v605_v46 = vmul.f32 -0.5, %v1651_v57  ;;  %v614_v36 = vmul.f32 -0.5, %v1655_v60  ;;  %vm1708_vm3 = vcmp.lt.f32.partialorder %v599_v38, 0.0004427343  ;;  %v623_v61 = vmul.f32 -0.5, %v1658_v7 }
 0x127   : > { %v629_v0 = vadd.f32 1.0, %v1666_v20  ;;  %1052 = vlog2.f32 %v620_v29  ;;  %v529_v54 = vsub.f32 %v513_v5, %v521_v22  ;;  %v517_v58 = vmax.f32 %v1556_v28, 0.0 }
 0x128   : > { %v615_v11 = vadd.f32 1.0, %v614_v36  ;;  %v624_v38 = vadd.f32 1.0, %v623_v61 }
 0x12b   : > { %v1041_v23 = vpop.eup %1040 }
 0x12c   : > { %v1043_v1 = vpop.eup %1042  ;;  %v568_v8 = vmul.f32 0.6931472, %v1041_v23  ;;  %v522_v23 = vmul.f32 %v325_v14, %v1543_v15 }
 0x12d   : > { %v1045_v2 = vpop.eup %1044  ;;  %v577_v19 = vmul.f32 0.6931472, %v1043_v1 }
 0x12e   : > { %v586_v51 = vmul.f32 0.6931472, %v1045_v2  ;;  %v1047_v18 = vpop.eup %1046  ;;  %v574_v24 = vsel %vm1675_vm0, %v571_v9, %v568_v8  ;;  %v598_v2 = vmul.f32 %v1648_v50, %v597_v37  ;;  %v327_v8 = vld [vmem:[%s1507_s0 + $0x30] sm:$0xff] }
 0x12f   : > { %v583_v1 = vsel %vm1685_vm1, %v580_v10, %v577_v19  ;;  %v595_v6 = vmul.f32 0.6931472, %v1047_v18  ;;  %v638_v15 = vadd.f32 %v574_v24, %v526_v30  ;;  %v516_v30 = vmax.f32 %v1553_v27, 0.0 }
 0x130   : > { %v592_v40 = vsel %vm1690_vm2, %v589_v49, %v586_v51  ;;  %v639_v16 = vadd.f32 %v583_v1, %v527_v45  ;;  %v515_v49 = vmax.f32 %v1546_v17, 0.0  ;;  %v1049_v9 = vpop.eup %1048  ;;  %v606_v10 = vadd.f32 1.0, %v605_v46 }
 0x131   : > { %v640_v59 = vadd.f32 %v592_v40, %v528_v25  ;;  %v601_v45 = vsel %vm1708_vm3, %v598_v2, %v595_v6  ;;  %v1721_v14 = vmul.f32 9.155274e-06, %v638_v15  ;;  %v608_v19 = vand.u32 2147483647, %v1651_v57  ;;  %v328_v25 = vld [vmem:[%s1507_s0 + $0x38] sm:$0xff] }
 0x132   : > { %v1725_v5 = vmul.f32 9.155274e-06, %v639_v16  ;;  %v524_v37 = vmul.f32 %v327_v8, %v1553_v27  ;;  %v641_v1 = vadd.f32 %v601_v45, %v529_v54  ;;  %v607_v6 = vmul.f32 %v1651_v57, %v606_v10 }
 0x133   : > { %v1727_v34 = vmul.f32 9.155274e-06, %v640_v59  ;;  %v632_v2 = vmul.f32 -0.5, %v1666_v20  ;;  %vm1735_vm4 = vcmp.lt.f32.partialorder %v608_v19, 0.0004427343  ;;  %v525_v57 = vmul.f32 %v328_v25, %v1556_v28 }
 0x134   : > { %v635_v10 = vand.u32 2147483647, %v1666_v20 }
 0x135   : > { %v633_v45 = vadd.f32 1.0, %v632_v2 }
 0x136   : > { %vm1769_vm7 = vcmp.lt.f32.partialorder %v635_v10, 0.0004427343 }
 0x198   : > { %v384_v44 = vpop.xlane.xlu0 %383 }
 0x199   : > { %1054 = vlog2.f32 %v384_v44  ;;  %v326_v44 = vld [vmem:[%s1507_s0 + $0x28] sm:$0xff] }
 0x19a   : > { %1056 = vlog2.f32 %v629_v0  ;;  %v523_v50 = vmul.f32 %v326_v44, %v1546_v17  ;;  %v1715_v0 = vsub.f32 %v514_v26, %v522_v23  ;;  %v617_v17 = vand.u32 2147483647, %v1655_v60 }
 0x19b   : > { %v604_v26 = vmul.f32 0.6931472, %v1049_v9  ;;  %v616_v44 = vmul.f32 %v1655_v60, %v615_v11  ;;  %v625_v60 = vmul.f32 %v1658_v7, %v624_v38  ;;  %v1753_v11 = vmul.f32 9.155274e-06, %v641_v1 }
 0x19c   : > { %v387_v21 = vpop.xlane.xlu0 %386  ;;  %v456_v29 = vpop.xlane.xlu1 %455  ;;  %vm1739_vm5 = vcmp.lt.f32.partialorder %v617_v17, 0.0004427343  ;;  %v1757_v17 = vsub.f32 %v517_v58, %v525_v57 }
 0x19d   : > { %1058 = vlog2.f32 %v387_v21  ;;  %v1051_v21 = vpop.eup %1050  ;;  %v610_v9 = vsel %vm1735_vm4, %v607_v6, %v604_v26  ;;  %v634_v26 = vmul.f32 %v1666_v20, %v633_v45 }
 0x19e   : > { %1060 = vlog2.f32 %v456_v29  ;;  %v1053_v24 = vpop.eup %1052  ;;  %v613_v46 = vmul.f32 0.6931472, %v1051_v21  ;;  %v642_v1 = vadd.f32 %v610_v9, %v1715_v0 }
 0x19f   : > { %1062 = vrcp.f32 %v456_v29  ;;  %v626_v29 = vand.u32 2147483647, %v1658_v7  ;;  %v622_v16 = vmul.f32 0.6931472, %v1053_v24  ;;  %v532_v7 = vsub.f32 %v516_v30, %v524_v37 }
 0x1a0   : > { %v459_v18 = vpop.xlane.xlu1 %458  ;;  %v390_v51 = vpop.xlane.xlu0 %389 }
 0x1a1   : > { %1064 = vlog2.f32 %v459_v18  ;;  %vm1746_vm6 = vcmp.lt.f32.partialorder %v626_v29, 0.0004427343 }
 0x1a2   : > { %1066 = vrcp.f32 %v459_v18  ;;  %v628_v21 = vsel %vm1746_vm6, %v625_v60, %v622_v16 }
 0x1a3   : > { %1068 = vlog2.f32 %v390_v51  ;;  %v531_v51 = vsub.f32 %v515_v49, %v523_v50  ;;  %v619_v49 = vsel %vm1739_vm5, %v616_v44, %v613_v46  ;;  %v644_v27 = vadd.f32 %v628_v21, %v532_v7 }
 0x1a4   : > { %v462_v22 = vpop.xlane.xlu1 %461  ;;  %v393_v23 = vpop.xlane.xlu0 %392 }
 0x1a5   : > { %1070 = vlog2.f32 %v462_v22 }
 0x1a6   : > { %v1055_v40 = vpop.eup %1054  ;;  %1072 = vrcp.f32 %v462_v22 }
 0x1a7   : > { %1074 = vlog2.f32 %v393_v23  ;;  %v1057_v15 = vpop.eup %1056  ;;  %v395_v18 = vmul.f32 0.6931472, %v1055_v40 }
 0x1a8   : > { %v465_v54 = vpop.xlane.xlu1 %464  ;;  %v1761_v22 = vmul.f32 0.6931472, %v1057_v15 }
 0x1a9   : > { %1076 = vlog2.f32 %v465_v54  ;;  %v402_v23 = vsub.f32 %v1562_v42, %v395_v18  ;;  %v403_v38 = vsub.f32 %v1564_v43, %v395_v18 }
 0x1aa   : > { %v1059_v59 = vpop.eup %1058  ;;  %1078 = vrcp.f32 %v465_v54 }
 0x1ab   : > { %v1061_v8 = vpop.eup %1060  ;;  %v397_v50 = vmul.f32 0.6931472, %v1059_v59 }
 0x1ac   : > { %v1063_v28 = vpop.eup %1062  ;;  %v467_v19 = vmul.f32 0.6931472, %v1061_v8 }
 0x1ad   : > { %v486_v37 = vmul.f32 %v1063_v28, %v1610_v31  ;;  %v487_v42 = vmul.f32 %v1063_v28, %v1612_v32  ;;  %v405_v2 = vsub.f32 %v1570_v48, %v397_v50  ;;  %v643_v31 = vadd.f32 %v619_v49, %v531_v51 }
 0x1ae   : > { %v474_v24 = vsub.f32 %v1574_v52, %v467_v19  ;;  %v475_v25 = vsub.f32 %v1576_v53, %v467_v19  ;;  %v1065_v30 = vpop.eup %1064  ;;  %v404_v53 = vsub.f32 %v1568_v47, %v397_v50  ;;  %v637_v47 = vsel %vm1769_vm7, %v634_v26, %v1761_v22 }
 0x1af   : > { %v1067_v40 = vpop.eup %1066  ;;  %v469_v44 = vmul.f32 0.6931472, %v1065_v30  ;;  %v659_v61 = vmul.f32 9.155274e-06, %v643_v31  ;;  %v1917_v30 = vld [vmem:[#allocation21_spill] sm:$0xff] }
 0x1b0   : > { %v494_v6 = vsub.f32 %v474_v24, %v402_v23  ;;  %v495_v43 = vsub.f32 %v475_v25, %v403_v38  ;;  %v1069_v52 = vpop.eup %1068  ;;  %v488_v54 = vmul.f32 %v1067_v40, %v1614_v33  ;;  %v489_v32 = vmul.f32 %v1067_v40, %v1618_v35  ;;  %v1916_v25 = vld [vmem:[#allocation20_spill] sm:$0xff]  ;;  %v1918_v40 = vld [vmem:[#allocation22_spill] sm:$0xff] }
 0x1b1   : > { %v476_v36 = vsub.f32 %v1578_v55, %v469_v44  ;;  %v477_v15 = vsub.f32 %v1580_v56, %v469_v44  ;;  %v399_v58 = vmul.f32 0.6931472, %v1069_v52  ;;  %v658_v56 = vmul.f32 9.155274e-06, %v642_v1 }
 0x1b2   : > { %v502_v20 = vmul.f32 %v494_v6, %v486_v37  ;;  %v503_v46 = vmul.f32 %v495_v43, %v487_v42  ;;  %v1071_v0 = vpop.eup %1070  ;;  %v1919_v6 = vld [vmem:[#allocation23_spill] sm:$0xff]  ;;  %v660_v31 = vmul.f32 9.155274e-06, %v644_v27 }
 0x1b3   : > { %v1073_v57 = vpop.eup %1072  ;;  %v496_v60 = vsub.f32 %v476_v36, %v404_v53  ;;  %v497_v59 = vsub.f32 %v477_v15, %v405_v2  ;;  %v406_v55 = vsub.f32 %v1586_v62, %v399_v58  ;;  %v471_v51 = vmul.f32 0.6931472, %v1071_v0 }
 0x1b4   : > { %v646_v48 = vmul.f32 0.0875, %v502_v20  ;;  %v647_v16 = vmul.f32 0.0875, %v503_v46  ;;  %v1075_v18 = vpop.eup %1074  ;;  %v407_v10 = vsub.f32 %v1588_v63, %v399_v58  ;;  %v490_v62 = vmul.f32 %v1073_v57, %v1622_v39 }
 0x1b5   : > { %v504_v8 = vmul.f32 %v496_v60, %v488_v54  ;;  %v505_v9 = vmul.f32 %v497_v59, %v489_v32  ;;  %v478_v28 = vsub.f32 %v1590_v3, %v471_v51  ;;  %v479_v19 = vsub.f32 %v1592_v4, %v471_v51 }
 0x1b6   : > { %v662_v33 = vadd.f32 %v1721_v14, %v646_v48  ;;  %v663_v35 = vadd.f32 %v1725_v5, %v647_v16  ;;  %v1077_v45 = vpop.eup %1076  ;;  %v401_v7 = vmul.f32 0.6931472, %v1075_v18  ;;  %v491_v5 = vmul.f32 %v1073_v57, %v1624_v41 }
 0x1b7   : > { %v648_v49 = vmul.f32 0.0875, %v504_v8  ;;  %v473_v50 = vmul.f32 0.6931472, %v1077_v45  ;;  %v1079_v22 = vpop.eup %1078  ;;  %v649_v23 = vmul.f32 0.0875, %v505_v9  ;;  %v498_v14 = vsub.f32 %v478_v28, %v406_v55 }
 0x1b8   : > { %v671_v21 = vadd.f32 %v663_v35, %v662_v33  ;;  %v499_v38 = vsub.f32 %v479_v19, %v407_v10  ;;  %v408_v24 = vsub.f32 %v1598_v12, %v401_v7  ;;  %v409_v63 = vsub.f32 %v1600_v13, %v401_v7  ;;  %v670_v55 = vld [vmem:[%s1518_s30] sm:$0xff] }
 0x1b9   : > { %v480_v3 = vsub.f32 %v1916_v25, %v473_v50  ;;  %v481_v4 = vsub.f32 %v1917_v30, %v473_v50  ;;  %v506_v37 = vmul.f32 %v498_v14, %v490_v62  ;;  %v645_v39 = vadd.f32 %v637_v47, %v1757_v17 }
 0x1ba   : > { %v507_v26 = vmul.f32 %v499_v38, %v491_v5  ;;  %v664_v29 = vadd.f32 %v1727_v34, %v648_v49  ;;  %v492_v42 = vmul.f32 %v1079_v22, %v1918_v40  ;;  %v493_v43 = vmul.f32 %v1079_v22, %v1919_v6 }
 0x1bb   : > { %v500_v1 = vsub.f32 %v480_v3, %v408_v24  ;;  %v501_v41 = vsub.f32 %v481_v4, %v409_v63  ;;  %v650_v44 = vmul.f32 0.0875, %v506_v37  ;;  %v665_v13 = vadd.f32 %v1753_v11, %v649_v23 }
 0x1bc   : > { %v651_v12 = vmul.f32 0.0875, %v507_v26  ;;  %v672_v52 = vadd.f32 %v671_v21, %v664_v29  ;;  %v661_v15 = vmul.f32 9.155274e-06, %v645_v39 }
 0x1bd   : > { %v508_v53 = vmul.f32 %v500_v1, %v492_v42  ;;  %v509_v2 = vmul.f32 %v501_v41, %v493_v43  ;;  %v666_v20 = vadd.f32 %v658_v56, %v650_v44 }
 0x1be   : > { %v673_v46 = vadd.f32 %v672_v52, %v665_v13  ;;  %v667_v34 = vadd.f32 %v659_v61, %v651_v12 }
 0x1bf   : > { %v652_v36 = vmul.f32 0.0875, %v508_v53  ;;  %v653_v17 = vmul.f32 0.0875, %v509_v2 }
 0x1c0   : > { %v674_v0 = vadd.f32 %v673_v46, %v666_v20 }
 0x1c1   : > { %v668_v54 = vadd.f32 %v660_v31, %v652_v36  ;;  %v669_v58 = vadd.f32 %v661_v15, %v653_v17 }
 0x1c2   : > { %v675_v32 = vadd.f32 %v674_v0, %v667_v34 }
 0x1c4   : > { %v676_v47 = vadd.f32 %v675_v32, %v668_v54 }
 0x1c6   : > { %v677_v57 = vadd.f32 %v676_v47, %v669_v58 }
 0x1c8   : > { %678 = vadd.xlane.f32.xlu0 %v677_v57 }
 0x251   : > { %v679_v11 = vpop.xlane.xlu0 %678 }
 0x252   : > { %v680_v48 = vrot.slane %v679_v11, 4 }
 0x254   : > { %v681_v27 = vadd.f32 %v680_v48, %v679_v11 }
 0x256   : > { %v682_v16 = vrot.slane %v681_v27, 2 }
 0x258   : > { %v683_v60 = vadd.f32 %v682_v16, %v681_v27 }
 0x25a   : > { %v684_v59 = vrot.slane %v683_v60, 1 }
 0x25c   : > { %v685_v18 = vadd.f32 %v684_v59, %v683_v60 }
 0x25e   : > { %875 = vpush %v685_v18 }
 0x28f   : > { %s876_s4 = spop %875 }
 0x290   : > { %v687_v51 = vstv %s876_s4 }
 0x291   : > { %v688_v56 = vadd.f32 %v687_v51, %v670_v55 }
 0x293   : > { %689 = vst [vmem:[%s1518_s30] sm:$0xff] %v688_v56 }
 0x294   : > { %1177 = shalt.err (!%p1174_p9)
}
 0x295   : > { %s1178_s26 = scalar_lea.hbm %s702_s8, 128  ;;  %s1182_s5 = scalar_lea.hbm %s1862_s3, 256 }
 0x296   : > { %p1179_p10 = scmp.ne.s32.totalorder %s702_s8, %s1178_s26  ;;  %p1183_p13 = scmp.lt.s32.totalorder %s702_s8, %s1862_s3 }
 0x297   : > { %p1184_p3 = scmp.lt.s32.totalorder %s1182_s5, %s1178_s26 }
 0x298   : > { %p1180_p4 = pnand %p1179_p10, %p1414_p12 }
 0x299   : > { %p1185_p7 = por %p1184_p3, %p1183_p13 }
 0x29a   : > { %p1181_p11 = pneg %p1180_p4 }
 0x29c   : > { %p1186_p6 = pnand %p1185_p7, %p1181_p11 }
 0x29e   : > { %1189 = shalt.err (!%p1186_p6)
}
 0x29f   : > { %883 = dma.vmem_to_hbm [thread:$0]  (%p1414_p12), %s705_s23, 128, %s702_s8, %s691_s28  }
 0x2a0 PF: > { %p900_p5 = scmp.ge.s32.totalorder %s1288_s22, 2  ;;  %s716_s29 = sand.u32 1, %s1248_s12  }
 0x2a1   : > { %s717_s0 = scalar_lea.sflag [#allocation4], %s716_s29 }
 0x2a2   : > { %p896_p0 = pnand %p900_p5, %p1424_p2 }
 0x2a4   : > { %p897_p1 = pneg %p896_p0 }
 0x2a6   : > { %1243 = dma.done.wait (%p897_p1), %s717_s0, 128  }
 0x2a7   : > { %1245 = vsyncadd (%p897_p1), %s717_s0, 4294967168  ;;  %s22_s22 = sadd.s32 1, %s1288_s22   ;;  %s1920_s27 = sld [smem:[#allocation12_spill]] }
 0x2a8   : > { %p19_p8 = scmp.ge.s32.totalorder %s22_s22, 6   ;;  %s1921_s14 = sld [smem:[#allocation18_spill]] }
 0x2a9   : > { %s1922_s24 = sld [smem:[#allocation13_spill]]  ;;  %s1928_s12 = smov %s1252_s13 }
 0x2aa   : > { %s1923_s17 = sld [smem:[#allocation19_spill]]  ;;  %s1930_s15 = smov %s1264_s16 }
 0x2ab   : > { %s1924_s18 = sld [smem:[#allocation14_spill]]  ;;  %21 = sbr.rel (!%p19_p8) target bundleno = 14 (0xe), region = 105 }
 0x2ac   : > { %s1925_s19 = sld [smem:[#allocation15_spill]] }
 0x2ad   : > { %s1926_s20 = sld [smem:[#allocation16_spill]]  ;;  %s1929_s13 = smov %s1920_s27 }
 0x2ae   : > { %s1927_s21 = sld [smem:[#allocation17_spill]] }
 0x2af   : > { %s1931_s16 = smov %s1922_s24 }
 0x2b0   :  { %722 = vsyncpa [#allocation3], 1 }
 0x2b1   :  { %724 = vsyncpa [#allocation3 + $0x1], 1 }
 0x2b2   :  { %725 = vsyncpa [#allocation6], 1 }
 0x2b3   :  { %727 = vsyncpa [#allocation6 + $0x1], 1 }
 0x2b4   :  { %728 = vsyncpa [#allocation4], 1 }
 0x2b5   :  { %730 = vsyncpa [#allocation4 + $0x1], 1 }

</bundles_post_ra>
